<compile_context>
chip_gen: v5e
topology: v5e:2x2
jax: 0.10.0
libtpu: 0.0.40
codegen_flags: <defaults>
</compile_context>

<pallas_src>
import functools

import jax
import jax.numpy as jnp
from jax.experimental import pallas as pl
from jax.experimental.pallas import tpu as pltpu


def _gln_stats_kernel(x_ref, mean_ref, rstd_ref, sum_acc, sq_acc, *, eps, inv_count):
    """Pass 1: fused single-sweep sum / sumsq reduction per sample -> mean, rstd."""
    t = pl.program_id(1)

    @pl.when(t == 0)
    def _():
        sum_acc[...] = jnp.zeros_like(sum_acc)
        sq_acc[...] = jnp.zeros_like(sq_acc)

    # f32 accumulation; only this (1, C, tT) tile is upcast, never the whole slab.
    xf = x_ref[...].astype(jnp.float32)
    sum_acc[...] += jnp.sum(xf)
    sq_acc[...] += jnp.sum(xf * xf)

    @pl.when(t == pl.num_programs(1) - 1)
    def _():
        mean = sum_acc[...] * inv_count                                  # (1, 1)
        # E[x^2] - mean^2 with f32 accumulation; clamp for numerical safety.
        var = jnp.maximum(sq_acc[...] * inv_count - mean * mean, 0.0)
        rstd = jax.lax.rsqrt(var + eps)
        mean_ref[...] = mean.reshape(1, 1, 1)
        rstd_ref[...] = rstd.reshape(1, 1, 1)


def _gln_apply_kernel(mean_ref, rstd_ref, w_ref, b_ref, x_ref, o_ref):
    """Pass 2: streaming per-channel affine  y = x * scale + shift  (one FMA per element)."""
    mean = mean_ref[...]                        # (1, 1, 1) f32
    rstd = rstd_ref[...]                        # (1, 1, 1) f32
    w = w_ref[...].astype(jnp.float32)          # (C, 1)
    b = b_ref[...].astype(jnp.float32)          # (C, 1)
    scale = w * rstd                            # (1, C, 1) — computed once per tile
    shift = b - mean * scale                    # (1, C, 1)
    x = x_ref[...]                              # native dtype, no full f32 copy
    y = x * scale.astype(x.dtype) + shift.astype(x.dtype)
    o_ref[...] = y.astype(o_ref.dtype)


def _pick_time_tile(T, max_tile=2048):
    """Largest multiple of 128 that divides T (capped), else the full T for small/ragged inputs."""
    if T % 128 != 0:
        return T
    cand = min(max_tile, T)
    cand -= cand % 128
    while cand >= 128:
        if T % cand == 0:
            return cand
        cand -= 128
    return T


def global_layer_norm(x, weight, bias, eps=1e-5, time_tile=None):
    """x: (N, C, T); weight, bias: (C, 1). Returns (N, C, T)."""
    N, C, T = x.shape
    if time_tile is None:
        time_tile = _pick_time_tile(T)
    assert T % time_tile == 0, "time_tile must divide T"
    nT = T // time_tile

    # VMEM budget: double-buffered in + out tiles plus small temps; capped to v7x physical.
    block_bytes = C * time_tile * x.dtype.itemsize
    vmem_limit = int(min(64 * 1024 * 1024, max(32 * 1024 * 1024, 8 * block_bytes)))

    # ---- Pass 1: per-sample mean / rstd (single fused sweep over x) -------------------------
    stats_kernel = functools.partial(
        _gln_stats_kernel, eps=float(eps), inv_count=1.0 / float(C * T))
    mean, rstd = pl.pallas_call(
        stats_kernel,
        out_shape=(
            jax.ShapeDtypeStruct((N, 1, 1), jnp.float32),
            jax.ShapeDtypeStruct((N, 1, 1), jnp.float32),
        ),
        grid_spec=pltpu.PrefetchScalarGridSpec(
            num_scalar_prefetch=0,
            grid=(N, nT),
            in_specs=[
                pl.BlockSpec((1, C, time_tile), lambda n, t: (n, 0, t)),
            ],
            out_specs=[
                pl.BlockSpec((1, 1, 1), lambda n, t: (n, 0, 0)),
                pl.BlockSpec((1, 1, 1), lambda n, t: (n, 0, 0)),
            ],
            scratch_shapes=[
                pltpu.VMEM((1, 1), jnp.float32),   # running sum(x)
                pltpu.VMEM((1, 1), jnp.float32),   # running sum(x*x)
            ],
        ),
        compiler_params=pltpu.CompilerParams(
            dimension_semantics=("parallel", "arbitrary"),
            vmem_limit_bytes=vmem_limit,
        ),
    )(x)

    # ---- Pass 2: streaming normalize + affine ------------------------------------------------
    # TODO(synk): elementwise_affine=False path (pass ones/zeros) not exposed in this wrapper.
    out = pl.pallas_call(
        _gln_apply_kernel,
        out_shape=jax.ShapeDtypeStruct((N, C, T), x.dtype),
        grid_spec=pltpu.PrefetchScalarGridSpec(
            num_scalar_prefetch=0,
            grid=(N, nT),
            in_specs=[
                pl.BlockSpec((1, 1, 1), lambda n, t: (n, 0, 0)),           # mean
                pl.BlockSpec((1, 1, 1), lambda n, t: (n, 0, 0)),           # rstd
                pl.BlockSpec((C, 1), lambda n, t: (0, 0)),                 # weight
                pl.BlockSpec((C, 1), lambda n, t: (0, 0)),                 # bias
                pl.BlockSpec((1, C, time_tile), lambda n, t: (n, 0, t)),   # x tile
            ],
            out_specs=pl.BlockSpec((1, C, time_tile), lambda n, t: (n, 0, t)),
        ),
        compiler_params=pltpu.CompilerParams(
            dimension_semantics=("parallel", "parallel"),   # N and T tiles feed both TCs (v7x)
            vmem_limit_bytes=vmem_limit,
        ),
    )(mean, rstd, weight, bias, x)
    return out


def global_layer_norm_ref(x, weight, bias, eps=1e-5):
    mean = jnp.mean(x, axis=(1, 2), keepdims=True)
    var = jnp.mean((x - mean) ** 2, axis=(1, 2), keepdims=True)
    return weight * (x - mean) / jnp.sqrt(var + eps) + bias


if __name__ == "__main__":
    key = jax.random.PRNGKey(0)

    # Case 1: tiny shape matching the PyTorch module's 3-D (N, C, T) contract.
    N, C, T = 2, 4, 16
    x = jax.random.normal(key, (N, C, T), dtype=jnp.float32)
    # nn.Parameter(torch.ones(dim, 1)) / torch.zeros(dim, 1)
    weight = jnp.ones((C, 1), dtype=jnp.float32)
    bias = jnp.zeros((C, 1), dtype=jnp.float32)
    out = jax.block_until_ready(global_layer_norm(x, weight, bias))
    ref = global_layer_norm_ref(x, weight, bias)
    assert out.shape == (N, C, T)
    assert jnp.allclose(out, ref, atol=1e-5, rtol=1e-5), "mismatch vs reference (case 1)"

    # Case 2: lane-dense tiles + multi-tile reduction along T (exercises cross-tile accumulation).
    N2, C2, T2 = 2, 8, 256
    k1, k2 = jax.random.split(key)
    x2 = jax.random.normal(k1, (N2, C2, T2), dtype=jnp.float32)
    w2 = 1.0 + 0.1 * jax.random.normal(k2, (C2, 1), dtype=jnp.float32)
    b2 = 0.05 * jnp.arange(C2, dtype=jnp.float32).reshape(C2, 1)
    out2 = jax.block_until_ready(global_layer_norm(x2, w2, b2, time_tile=128))
    ref2 = global_layer_norm_ref(x2, w2, b2)
    assert jnp.allclose(out2, ref2, atol=1e-4, rtol=1e-4), "mismatch vs reference (case 2)"

    print("KERNEL_OK")
</pallas_src>

<mosaic_0001>
module attributes {stable_mosaic.version = 11 : i64} {
  func.func @_gln_stats_kernel(%arg0: i32, %arg1: i32, %arg2: memref<1x4x16xf32, #tpu.memory_space<vmem>>, %arg3: memref<1x1x1xf32, #tpu.memory_space<vmem>>, %arg4: memref<1x1x1xf32, #tpu.memory_space<vmem>>, %arg5: memref<1x1xf32, #tpu.memory_space<vmem>>, %arg6: memref<1x1xf32, #tpu.memory_space<vmem>>) attributes {dimension_semantics = [#tpu.dimension_semantics<parallel>, #tpu.dimension_semantics<arbitrary>], iteration_bounds = array<i64: 2, 1>, scalar_prefetch = 0 : i64, scratch_operands = 2 : i64, tpu.core_type = #tpu.core_type<tc>, window_params = [{transform_indices = @transform_0, window_bounds = array<i64: 1, 4, 16>}, {transform_indices = @transform_1, window_bounds = array<i64: 1, 1, 1>}, {transform_indices = @transform_2, window_bounds = array<i64: 1, 1, 1>}]} {
    %c0_i32 = arith.constant 0 : i32
    %0 = arith.cmpi eq, %arg1, %c0_i32 : i32
    %1 = arith.extui %0 : i1 to i32
    %c0_i32_0 = arith.constant 0 : i32
    %2 = arith.cmpi ne, %1, %c0_i32_0 : i32
    scf.if %2 {
      %cst_14 = arith.constant 0.000000e+00 : f32
      %24 = vector.broadcast %cst_14 : f32 to vector<1x1xf32>
      %c0_15 = arith.constant 0 : index
      %c0_16 = arith.constant 0 : index
      %25 = vector.load %arg5[%c0_15, %c0_16] : memref<1x1xf32, #tpu.memory_space<vmem>>, vector<1x1xf32>
      tpu.vector_store %arg5[%c0_15, %c0_16], %24 {strides = array<i32>} : memref<1x1xf32, #tpu.memory_space<vmem>>, vector<1x1xf32>,
      %cst_17 = arith.constant 0.000000e+00 : f32
      %26 = vector.broadcast %cst_17 : f32 to vector<1x1xf32>
      %c0_18 = arith.constant 0 : index
      %c0_19 = arith.constant 0 : index
      %27 = vector.load %arg6[%c0_18, %c0_19] : memref<1x1xf32, #tpu.memory_space<vmem>>, vector<1x1xf32>
      tpu.vector_store %arg6[%c0_18, %c0_19], %26 {strides = array<i32>} : memref<1x1xf32, #tpu.memory_space<vmem>>, vector<1x1xf32>,
    } else {
    }
    %c0 = arith.constant 0 : index
    %c0_1 = arith.constant 0 : index
    %c0_2 = arith.constant 0 : index
    %3 = vector.load %arg2[%c0, %c0_1, %c0_2] : memref<1x4x16xf32, #tpu.memory_space<vmem>>, vector<1x4x16xf32>
    %c0_3 = arith.constant 0 : index
    %c0_4 = arith.constant 0 : index
    %4 = vector.load %arg5[%c0_3, %c0_4] : memref<1x1xf32, #tpu.memory_space<vmem>>, vector<1x1xf32>
    %5 = vector.shape_cast %3 : vector<1x4x16xf32> to vector<1x1x4x16xf32>
    %cst = arith.constant dense<0.000000e+00> : vector<1xf32>
    %6 = vector.multi_reduction <add>, %5, %cst [1, 2, 3] : vector<1x1x4x16xf32> to vector<1xf32>
    %7 = vector.shape_cast %6 : vector<1xf32> to vector<1x1x1x1xf32>
    %8 = vector.extract %7[0, 0, 0, 0] : f32 from vector<1x1x1x1xf32>
    %9 = vector.broadcast %8 : f32 to vector<1x1xf32>
    %10 = arith.addf %4, %9 : vector<1x1xf32>
    %c0_5 = arith.constant 0 : index
    %c0_6 = arith.constant 0 : index
    %11 = vector.load %arg5[%c0_5, %c0_6] : memref<1x1xf32, #tpu.memory_space<vmem>>, vector<1x1xf32>
    tpu.vector_store %arg5[%c0_5, %c0_6], %10 {strides = array<i32>} : memref<1x1xf32, #tpu.memory_space<vmem>>, vector<1x1xf32>,
    %c0_7 = arith.constant 0 : index
    %c0_8 = arith.constant 0 : index
    %12 = vector.load %arg6[%c0_7, %c0_8] : memref<1x1xf32, #tpu.memory_space<vmem>>, vector<1x1xf32>
    %13 = arith.mulf %3, %3 : vector<1x4x16xf32>
    %14 = vector.shape_cast %13 : vector<1x4x16xf32> to vector<1x1x4x16xf32>
    %cst_9 = arith.constant dense<0.000000e+00> : vector<1xf32>
    %15 = vector.multi_reduction <add>, %14, %cst_9 [1, 2, 3] : vector<1x1x4x16xf32> to vector<1xf32>
    %16 = vector.shape_cast %15 : vector<1xf32> to vector<1x1x1x1xf32>
    %17 = vector.extract %16[0, 0, 0, 0] : f32 from vector<1x1x1x1xf32>
    %18 = vector.broadcast %17 : f32 to vector<1x1xf32>
    %19 = arith.addf %12, %18 : vector<1x1xf32>
    %c0_10 = arith.constant 0 : index
    %c0_11 = arith.constant 0 : index
    %20 = vector.load %arg6[%c0_10, %c0_11] : memref<1x1xf32, #tpu.memory_space<vmem>>, vector<1x1xf32>
    tpu.vector_store %arg6[%c0_10, %c0_11], %19 {strides = array<i32>} : memref<1x1xf32, #tpu.memory_space<vmem>>, vector<1x1xf32>,
    %c0_i32_12 = arith.constant 0 : i32
    %21 = arith.cmpi eq, %arg1, %c0_i32_12 : i32
    %22 = arith.extui %21 : i1 to i32
    %c0_i32_13 = arith.constant 0 : i32
    %23 = arith.cmpi ne, %22, %c0_i32_13 : i32
    scf.if %23 {
      %c0_14 = arith.constant 0 : index
      %c0_15 = arith.constant 0 : index
      %24 = vector.load %arg5[%c0_14, %c0_15] : memref<1x1xf32, #tpu.memory_space<vmem>>, vector<1x1xf32>
      %cst_16 = arith.constant 1.562500e-02 : f32
      %25 = vector.broadcast %cst_16 : f32 to vector<1x1xf32>
      %26 = arith.mulf %24, %25 : vector<1x1xf32>
      %c0_17 = arith.constant 0 : index
      %c0_18 = arith.constant 0 : index
      %27 = vector.load %arg6[%c0_17, %c0_18] : memref<1x1xf32, #tpu.memory_space<vmem>>, vector<1x1xf32>
      %cst_19 = arith.constant 1.562500e-02 : f32
      %28 = vector.broadcast %cst_19 : f32 to vector<1x1xf32>
      %29 = arith.mulf %27, %28 : vector<1x1xf32>
      %30 = arith.mulf %26, %26 : vector<1x1xf32>
      %31 = arith.subf %29, %30 : vector<1x1xf32>
      %cst_20 = arith.constant 0.000000e+00 : f32
      %32 = vector.broadcast %cst_20 : f32 to vector<1x1xf32>
      %33 = arith.maximumf %31, %32 : vector<1x1xf32>
      %cst_21 = arith.constant 9.99999974E-6 : f32
      %34 = vector.broadcast %cst_21 : f32 to vector<1x1xf32>
      %35 = arith.addf %33, %34 : vector<1x1xf32>
      %36 = math.rsqrt %35 : vector<1x1xf32>
      %37 = vector.shape_cast %26 : vector<1x1xf32> to vector<1x1x1xf32>
      %c0_22 = arith.constant 0 : index
      %c0_23 = arith.constant 0 : index
      %c0_24 = arith.constant 0 : index
      %38 = vector.load %arg3[%c0_22, %c0_23, %c0_24] : memref<1x1x1xf32, #tpu.memory_space<vmem>>, vector<1x1x1xf32>
      tpu.vector_store %arg3[%c0_22, %c0_23, %c0_24], %37 {strides = array<i32>} : memref<1x1x1xf32, #tpu.memory_space<vmem>>, vector<1x1x1xf32>,
      %39 = vector.shape_cast %36 : vector<1x1xf32> to vector<1x1x1xf32>
      %c0_25 = arith.constant 0 : index
      %c0_26 = arith.constant 0 : index
      %c0_27 = arith.constant 0 : index
      %40 = vector.load %arg4[%c0_25, %c0_26, %c0_27] : memref<1x1x1xf32, #tpu.memory_space<vmem>>, vector<1x1x1xf32>
      tpu.vector_store %arg4[%c0_25, %c0_26, %c0_27], %39 {strides = array<i32>} : memref<1x1x1xf32, #tpu.memory_space<vmem>>, vector<1x1x1xf32>,
    } else {
    }
    return
  }
  func.func @transform_0(%arg0: i32, %arg1: i32) -> (i32, i32, i32) {
    %c0_i32 = arith.constant 0 : i32
    %c0_i32_0 = arith.constant 0 : i32
    return %arg0, %c0_i32, %arg1 : i32, i32, i32
  }
  func.func @transform_1(%arg0: i32, %arg1: i32) -> (i32, i32, i32) {
    %c0_i32 = arith.constant 0 : i32
    %c0_i32_0 = arith.constant 0 : i32
    %c0_i32_1 = arith.constant 0 : i32
    return %arg0, %c0_i32, %c0_i32_0 : i32, i32, i32
  }
  func.func @transform_2(%arg0: i32, %arg1: i32) -> (i32, i32, i32) {
    %c0_i32 = arith.constant 0 : i32
    %c0_i32_0 = arith.constant 0 : i32
    %c0_i32_1 = arith.constant 0 : i32
    return %arg0, %c0_i32, %c0_i32_0 : i32, i32, i32
  }
}

</mosaic_0001>

<bundles_post_ra>
// kernel: tpu_custom_call.1
= control target key start
LH: loop header
LB: loop body
LE: loop exit
PB: predicated region body
PF: predicated region fallthrough
CT: control target
= control target key end

     0   :  { %8 = vsyncpa [#allocation5], 0  ;;  %s605_s0 = inlined_call_operand.hbm [shape: f32[2,4,16], index: 0, kind: input, shape index: {}]   ;;  %s606_s1 = inlined_call_operand.vmem [shape: f32[2,1,1], index: 1, kind: output, shape index: {0}]   ;;  %s607_s2 = inlined_call_operand.vmem [shape: f32[2,1,1], index: 2, kind: output, shape index: {1}]  }
   0x1   :  { %10 = vsyncpa [#allocation5 + $0x1], 0  ;;  %s508_s9 = smov 0   ;;  %s510_s10 = smov 0  }
   0x2   :  { %s512_s11 = smov 0   ;;  %s514_s12 = smov 0  }
   0x3   :  { %s516_s13 = smov 0   ;;  %s518_s14 = smov 0  }
   0x4 LB: > { %s338_s15 = sadd.s32 4294967295, %s490_s14   ;;  %s28_s16 = sadd.s32 1, %s486_s13  ;;  %s490_s14 = sphi %s518_s14, %s16_s14   ;;  %s486_s13 = sphi %s516_s13, %s614_s13   ;;  %s482_s12 = sphi %s514_s12, %s613_s12   ;;  %s478_s11 = sphi %s512_s11, %s612_s11   ;;  %s474_s10 = sphi %s510_s10, %s611_s10   ;;  %s470_s9 = sphi %s508_s9, %s610_s9  }
   0x5   : > { %p30_p0 = scmp.ge.s32.totalorder %s28_s16, 2  ;;  %s37_s17 = sadd.s32 1, %s478_s11 }
   0x6   : > { %p44_p1 = scmp.ne.s32.totalorder %s478_s11, %s474_s10  ;;  %p45_p2 = scmp.eq.s32.totalorder %s490_s14, 0 }
   0x7   : > { %s616_s16 = smov (%p30_p0, %s28_s16), 0  ;;  %p50_p4 = scmp.ne.s32.totalorder %s474_s10, %s470_s9 }
   0x8   : > { %p544_p3 = por %p45_p2, %p44_p1  ;;  %s32_s19 = ssub.s32 %s486_s13, %s616_s16 }
   0x9   : > { %p51_p5 = scmp.eq.s32.totalorder %s338_s15, 0  ;;  %p35_p6 = scmp.eq.s32.totalorder %s32_s19, 0 }
   0xa   : > { %p358_p8 = scmp.lt.s32.totalorder %s490_s14, 2  ;;  %s126_s22 = sand.u32 1, %s478_s11  }
   0xb   : > { %p551_p7 = por %p51_p5, %p50_p4  ;;  %s343_s23 = sshll.u32 %s486_s13, 2 }
   0xc   : > { %s557_s21 = scalar_select %p35_p6, %s478_s11, %s37_s17  }
   0xd   : > { %s342_s24 = sshll.u32 %s126_s22, 2  ;;  %s135_s27 = scalar_lea.hbm %s605_s0, %s343_s23 }
   0xe   : > { %s137_s28 = sshll.u32 %s135_s27, 4  ;;  %s130_s29 = scalar_lea.vmem [#allocation4], %s342_s24  ;;  %s138_s28 = int_to_ptr.hbm [resolvable:$true] %s137_s28 }
   0xf   : > { %s139_s30 = sshll.u32 %s130_s29, 4  ;;  %p355_p9 = pnand %p358_p8, %p544_p3  ;;  %s140_s30 = int_to_ptr.vmem [resolvable:$true] %s139_s30 }
  0x10   : > { %p344_p10 = scmp.ge.s32.totalorder %s490_s14, 1  ;;  %p144_p11 = scmp.lt.s32.totalorder %s490_s14, 3 }
  0x11   : > { %s127_s3 = scalar_lea.sflag [#allocation5], %s126_s22 }
  0x12   : > { %357 = dma.hbm_to_vmem [thread:$0]  (!%p355_p9), %s138_s28, 64, %s140_s30, %s127_s3  }
  0x13   : > { %p145_p12 = pnand %p344_p10, %p144_p11 }
  0x14   : > { %s150_s4 = sand.u32 (!%p145_p12), 1, %s474_s10  }
  0x15   : > { %148 = sbr.rel (%p145_p12) target bundleno = 253 (0xfd), region = 24  ;;  %s345_s5 = sshll.u32 (!%p145_p12), %s150_s4, 2 }
  0x16   : > { %s151_s6 = scalar_lea.sflag (!%p145_p12), [#allocation5], %s150_s4  ;;  %s154_s7 = scalar_lea.vmem (!%p145_p12), [#allocation4], %s345_s5 }
  0x1a   : > { %465 = dma.done.wait (%p551_p7), %s151_s6, 64  }
  0x1b   : > { %467 = vsyncadd (%p551_p7), %s151_s6, 4294967232  ;;  %vm192_vm0 = vcmask 125952   ;;  %v190_v0 = vld [vmem:[%s154_s7] sm:$0xf]  ;;  %vm187_vm1 = vcmask 0   ;;  %v492_v4 = vmov 0.0  }
  0x1c   : > { %v193_v1 = vsel %vm192_vm0, %v190_v0, 0.0  ;;  %v208_v2 = vmul.f32 %v190_v0, %v190_v0  ;;  %188 = vst.msk [vmem:[#allocation2] sm:$0x1] %vm187_vm1, %v492_v4  ;;  %p177_p13 = scmp.lt.s32.totalorder %s482_s12, 1 }
  0x1d   : > { %194 = vadd.xlane.f32.xlu0 %v193_v1  ;;  %189 = vst.msk [vmem:[#allocation3] sm:$0x1] %vm187_vm1, %v492_v4 }
  0x1e   : > { %v209_v3 = vsel %vm192_vm0, %v208_v2, 0.0  ;;  %s618_s12 = smov (!%p177_p13, %s482_s12), 1 }
  0x1f   : > { %s179_s18 = scalar_lea.vmem %s606_s1, %s618_s12  ;;  %s182_s22 = scalar_lea.vmem %s607_s2, %s618_s12 }
  0x23   : > { %v191_v19 = vld [vmem:[#allocation2] sm:$0x1] }
  0x24   : > { %v207_v22 = vld [vmem:[#allocation3] sm:$0x1] }
  0x25   : > { %210 = vadd.xlane.f32.xlu0 %v209_v3 }
  0x90   : > { %v195_v5 = vpop.xlane.xlu0 %194 }
  0x91   : > { %v196_v6 = vrot.slane %v195_v5, 4 }
  0x93   : > { %v197_v7 = vadd.f32 %v196_v6, %v195_v5 }
  0x95   : > { %v198_v8 = vrot.slane %v197_v7, 2 }
  0x97   : > { %v199_v9 = vadd.f32 %v198_v8, %v197_v7 }
  0x98   : > { %v211_v10 = vpop.xlane.xlu0 %210 }
  0x99   : > { %v212_v11 = vrot.slane %v211_v10, 4  ;;  %v200_v12 = vrot.slane %v199_v9, 1 }
  0x9b   : > { %v213_v13 = vadd.f32 %v212_v11, %v211_v10  ;;  %v201_v14 = vadd.f32 %v200_v12, %v199_v9 }
  0x9d   : > { %v214_v15 = vrot.slane %v213_v13, 2  ;;  %348 = vpush %v201_v14 }
  0x9f   : > { %v215_v16 = vadd.f32 %v214_v15, %v213_v13 }
  0xa1   : > { %v216_v17 = vrot.slane %v215_v16, 1 }
  0xa3   : > { %v217_v18 = vadd.f32 %v216_v17, %v215_v16 }
  0xa5   : > { %350 = vpush %v217_v18 }
  0xce   : > { %s349_s8 = spop %348 }
  0xcf   : > { %v203_v20 = vstv %s349_s8 }
  0xd0   : > { %v204_v21 = vadd.f32 %v203_v20, %v191_v19 }
  0xd2   : > { %206 = vst.msk [vmem:[#allocation2] sm:$0x1] %vm187_vm1, %v204_v21 }
  0xd6   : > { %s351_s9 = spop %350 }
  0xd7   : > { %v219_v23 = vstv %s351_s9 }
  0xd8   : > { %v220_v24 = vadd.f32 %v219_v23, %v207_v22 }
  0xd9   : > { %v225_v25 = vld [vmem:[#allocation2] sm:$0x1] }
  0xda   : > { %v226_v26 = vmul.f32 0.015625, %v225_v25  ;;  %221 = vst.msk [vmem:[#allocation3] sm:$0x1] %vm187_vm1, %v220_v24 }
  0xdc   : > { %243 = vst.msk [vmem:[%s179_s18] sm:$0x1] %vm187_vm1, %v226_v26  ;;  %v229_v28 = vmul.f32 %v226_v26, %v226_v26 }
  0xe1   : > { %v227_v27 = vld [vmem:[#allocation3] sm:$0x1] }
  0xe2   : > { %v228_v29 = vmul.f32 0.015625, %v227_v27 }
  0xe4   : > { %v230_v30 = vsub.f32 %v228_v29, %v229_v28 }
  0xe6   : > { %v231_v31 = vmax.f32 %v230_v30, 0.0 }
  0xe8   : > { %v232_v32 = vadd.f32 1e-05, %v231_v31 }
  0xea   : > { %408 = vrsqrt.f32 %v232_v32  ;;  %vm239_vm3 = vweird.f32 %v232_v32 }
  0xf0   : > { %v409_v33 = vpop.eup %408 }
  0xf1   : > { %v234_v34 = vmul.f32 %v409_v33, %v232_v32  ;;  %vm240_vm2 = vweird.f32 %v409_v33 }
  0xf2   : > { %vm241_vm4 = vmor %vm239_vm3, %vm240_vm2 }
  0xf3   : > { %v235_v35 = vmul.f32 %v409_v33, %v234_v34 }
  0xf5   : > { %v236_v36 = vmul.f32 0.5, %v235_v35 }
  0xf7   : > { %v237_v37 = vsub.f32 1.5, %v236_v36 }
  0xf9   : > { %v238_v38 = vmul.f32 %v409_v33, %v237_v37 }
  0xfb   : > { %v242_v39 = vsel %vm241_vm4, %v409_v33, %v238_v38 }
  0xfc   : > { %244 = vst.msk [vmem:[%s182_s22] sm:$0x1] %vm187_vm1, %v242_v39 }
  0xfd PF: > { %s16_s14 = sadd.s32 1, %s490_s14   ;;  %s610_s9 = smov %s474_s10 }
  0xfe   : > { %p13_p0 = scmp.ge.s32.totalorder %s16_s14, 4   ;;  %s611_s10 = smov %s478_s11 }
  0xff   : > { %s612_s11 = smov %s557_s21  ;;  %s613_s12 = smov %s486_s13 }
 0x100   : > { %s614_s13 = smov %s616_s16  ;;  %15 = sbr.rel (!%p13_p0) target bundleno = 4 (0x4), region = 84 }
 0x105   :  { %274 = vsyncpa [#allocation5], 1 }
 0x106   :  { %276 = vsyncpa [#allocation5 + $0x1], 1 }

</bundles_post_ra>
